<compile_context>
chip_gen: v7x
topology: tpu7x:2x2x1
jax: 0.10.0
libtpu: 0.0.40
codegen_flags: <defaults>
</compile_context>

<pallas_src>
import functools
import math

import jax
import jax.numpy as jnp
from jax.experimental import pallas as pl
from jax.experimental.pallas import tpu as pltpu

_LANES = 128
_SUBLANES = 8
_MAX_BLOCK_ROWS = 4096      # 4096*128*4B = 2 MiB per f32 input block
_CHUNK_ROWS = 256           # in-kernel fusion granularity (rows)
_NUM_CORES = 2              # leading "parallel" axis; serial on 1-TC chips


def _cdiv(a, b):
    return -(-a // b)


def _round_up(a, b):
    return _cdiv(a, b) * b


def _min_sublanes(dtype):
    # sub-32-bit dtypes pack 16 / 32 rows per vreg instead of 8
    itemsize = jnp.dtype(dtype).itemsize
    return _SUBLANES * max(1, 4 // max(1, itemsize))


def _iou_kernel(pr_ref, gt_ref, out_ref, *, logit_threshold, rows_total,
                block_rows, chunk, num_cores):
    """Accumulate per-lane partial sums of [intersection, sum(pr), sum(gt)]."""
    c = pl.program_id(0)
    i = pl.program_id(1)

    # Logical (unclamped) block index.  The index_map clamps the DMA source,
    # so duplicated / out-of-range blocks re-read valid data but are masked to
    # contribute exactly zero here.
    row0 = (i * num_cores + c) * block_rows
    limit = rows_total - row0           # number of valid rows in this block

    @pl.when(i == 0)
    def _():
        out_ref[...] = jnp.zeros_like(out_ref)

    row_iota = jax.lax.broadcasted_iota(jnp.int32, (chunk, _LANES), 0)

    acc_i = jnp.zeros((_SUBLANES, _LANES), jnp.float32)
    acc_p = jnp.zeros((_SUBLANES, _LANES), jnp.float32)
    acc_g = jnp.zeros((_SUBLANES, _LANES), jnp.float32)

    def fold(x):    # (chunk,128) -> (8,128): vreg-wise VPU adds, no XLU
        return jnp.sum(x.reshape(chunk // _SUBLANES, _SUBLANES, _LANES),
                       axis=0)

    # Fused threshold + mask + partial-reduce, one sub-chunk at a time so the
    # f32 temporaries stay ~chunk-sized (static slices -> zero-cost ref views).
    for k in range(block_rows // chunk):
        r = k * chunk
        pr = pr_ref[r:r + chunk, :].astype(jnp.float32)
        gt = gt_ref[r:r + chunk, :].astype(jnp.float32)
        valid = row_iota < (limit - r)
        # sigmoid(x) > t  <=>  x > logit(t)  (exact for t in (0,1))
        prm = (pr > logit_threshold) & valid
        gtv = jnp.where(valid, gt, 0.0)
        acc_i = acc_i + fold(jnp.where(prm, gtv, 0.0))   # gt * pr_indicator
        acc_p = acc_p + fold(prm.astype(jnp.float32))
        acc_g = acc_g + fold(gtv)

    out_ref[0:_SUBLANES, :] += acc_i
    out_ref[_SUBLANES:2 * _SUBLANES, :] += acc_p
    out_ref[2 * _SUBLANES:3 * _SUBLANES, :] += acc_g


def iou_metric(y_pr, y_gt, eps=1e-7, threshold=0.5, activation="sigmoid"):
    """Pallas implementation of IoUMetric.forward(y_pr, y_gt)."""
    # TODO(synk): softmax2d / None activations and threshold=None not wired up.
    assert activation == "sigmoid"
    assert 0.0 < threshold < 1.0
    logit_threshold = float(math.log(threshold / (1.0 - threshold)))

    pr_flat = y_pr.reshape(-1)
    gt_flat = y_gt.reshape(-1)
    if pr_flat.dtype == jnp.bool_:
        pr_flat = pr_flat.astype(jnp.float32)
    n = pr_flat.size
    assert gt_flat.size == n

    msub = max(_min_sublanes(pr_flat.dtype), _min_sublanes(gt_flat.dtype))
    rows = _cdiv(n, _LANES)

    per_core = _cdiv(rows, _NUM_CORES)
    sub = _CHUNK_ROWS if per_core >= _CHUNK_ROWS else msub
    block_rows = min(_MAX_BLOCK_ROWS, _round_up(per_core, sub))
    chunk = min(_CHUNK_ROWS, block_rows)   # block_rows % chunk == 0 by constr.

    rows_arr = max(rows, block_rows)
    padded_n = rows_arr * _LANES
    if padded_n != n:
        # TODO(synk): rare full-copy path (lane-unaligned or tiny input); the
        # common lane-aligned case streams the original buffers with no pad.
        if not jnp.issubdtype(pr_flat.dtype, jnp.floating):
            pr_flat = pr_flat.astype(jnp.float32)
        pr_pad = jnp.finfo(pr_flat.dtype).min   # strictly below any threshold
        pr_flat = jnp.pad(pr_flat, (0, padded_n - n), constant_values=pr_pad)
        gt_flat = jnp.pad(gt_flat, (0, padded_n - n), constant_values=0)

    pr2 = pr_flat.reshape(rows_arr, _LANES)
    gt2 = gt_flat.reshape(rows_arr, _LANES)

    nblocks = _cdiv(rows_arr, block_rows)
    steps = _cdiv(nblocks, _NUM_CORES)

    kernel = functools.partial(
        _iou_kernel,
        logit_threshold=logit_threshold,
        rows_total=rows_arr,
        block_rows=block_rows,
        chunk=chunk,
        num_cores=_NUM_CORES,
    )

    def in_map(c, i):
        # Clamp so leftover grid slots re-read the last in-bounds block; the
        # kernel masks them (using the unclamped logical index) to zero.
        return (jnp.minimum(i * _NUM_CORES + c, nblocks - 1), 0)

    bytes_accessed = (pr2.size * pr2.dtype.itemsize
                      + gt2.size * gt2.dtype.itemsize
                      + _NUM_CORES * 3 * _SUBLANES * _LANES * 4)

    partials = pl.pallas_call(
        kernel,
        out_shape=jax.ShapeDtypeStruct(
            (_NUM_CORES * 3 * _SUBLANES, _LANES), jnp.float32),
        grid_spec=pltpu.PrefetchScalarGridSpec(
            num_scalar_prefetch=0,
            grid=(_NUM_CORES, steps),
            in_specs=[
                pl.BlockSpec((block_rows, _LANES), in_map),
                pl.BlockSpec((block_rows, _LANES), in_map),
            ],
            out_specs=pl.BlockSpec((3 * _SUBLANES, _LANES),
                                   lambda c, i: (c, 0)),
        ),
        compiler_params=pltpu.CompilerParams(
            # TODO(synk): on v7x verify both TCs stream half the rows; switch
            # the first entry to pltpu.CORE_PARALLEL if plain parallel doesn't
            # shard (kept "parallel" for portability across 1-TC chips).
            dimension_semantics=("parallel", "arbitrary")),
        cost_estimate=pl.CostEstimate(
            flops=6 * int(pr2.size), transcendentals=0,
            bytes_accessed=int(bytes_accessed)),
    )(pr2, gt2)

    # tiny epilogue: single cross-lane reduce + scalar IoU formula
    p = partials.reshape(_NUM_CORES, 3, _SUBLANES, _LANES)
    sums = jnp.sum(p, axis=(0, 2, 3))            # [inter, sum(pr), sum(gt)]
    inter, psum, gsum = sums[0], sums[1], sums[2]
    union = gsum + psum - inter + eps
    return (inter + eps) / union


def _iou_reference(y_pr, y_gt, eps=1e-7, threshold=0.5):
    pr = jax.nn.sigmoid(y_pr.astype(jnp.float32))
    pr = (pr > threshold).astype(jnp.float32)
    gt = y_gt.astype(jnp.float32)
    inter = jnp.sum(gt * pr)
    union = jnp.sum(gt) + jnp.sum(pr) - inter + eps
    return (inter + eps) / union


if __name__ == "__main__":
    key = jax.random.PRNGKey(0)
    k1, k2 = jax.random.split(key)

    # y_pr: raw logits, y_gt: binary mask — NCHW, shape (2, 4, 16, 16)
    y_pr = jax.random.normal(k1, (2, 4, 16, 16), dtype=jnp.float32)
    y_gt = (jax.random.uniform(k2, (2, 4, 16, 16)) > 0.5).astype(jnp.float32)

    iou = iou_metric(y_pr, y_gt, eps=1e-7, threshold=0.5, activation="sigmoid")
    iou = jax.block_until_ready(iou)

    ref = _iou_reference(y_pr, y_gt)
    assert jnp.allclose(iou, ref, rtol=1e-5, atol=1e-6), (iou, ref)

    print("KERNEL_OK")
</pallas_src>

<mosaic_0001>
module attributes {stable_mosaic.version = 11 : i64} {
  func.func @_iou_kernel(%arg0: i32, %arg1: i32, %arg2: memref<8x128xf32, #tpu.memory_space<vmem>>, %arg3: memref<8x128xf32, #tpu.memory_space<vmem>>, %arg4: memref<24x128xf32, #tpu.memory_space<vmem>>) attributes {dimension_semantics = [#tpu.dimension_semantics<parallel>, #tpu.dimension_semantics<arbitrary>], iteration_bounds = array<i64: 2, 1>, scalar_prefetch = 0 : i64, scratch_operands = 0 : i64, tpu.core_type = #tpu.core_type<tc>, window_params = [{transform_indices = @transform_0, window_bounds = array<i64: 8, 128>}, {transform_indices = @transform_1, window_bounds = array<i64: 8, 128>}, {transform_indices = @transform_2, window_bounds = array<i64: 24, 128>}]} {
    %c2_i32 = arith.constant 2 : i32
    %0 = arith.muli %arg1, %c2_i32 : i32
    %1 = arith.addi %0, %arg0 : i32
    %c8_i32 = arith.constant 8 : i32
    %2 = arith.muli %1, %c8_i32 : i32
    %c16_i32 = arith.constant 16 : i32
    %3 = arith.subi %c16_i32, %2 : i32
    %c0_i32 = arith.constant 0 : i32
    %4 = arith.cmpi eq, %arg1, %c0_i32 : i32
    %5 = arith.extui %4 : i1 to i32
    %c0_i32_0 = arith.constant 0 : i32
    %6 = arith.cmpi ne, %5, %c0_i32_0 : i32
    scf.if %6 {
      %cst_23 = arith.constant 0.000000e+00 : f32
      %43 = vector.broadcast %cst_23 : f32 to vector<24x128xf32>
      %c0_24 = arith.constant 0 : index
      %c0_25 = arith.constant 0 : index
      %44 = vector.load %arg4[%c0_24, %c0_25] : memref<24x128xf32, #tpu.memory_space<vmem>>, vector<24x128xf32>
      tpu.vector_store %arg4[%c0_24, %c0_25], %43 {strides = array<i32>} : memref<24x128xf32, #tpu.memory_space<vmem>>, vector<24x128xf32>,
    } else {
    }
    %7 = tpu.iota {dimensions = array<i32: 0>} : vector<8x128xi32>
    %cst = arith.constant 0.000000e+00 : f32
    %8 = vector.broadcast %cst : f32 to vector<8x128xf32>
    %cst_1 = arith.constant 0.000000e+00 : f32
    %9 = vector.broadcast %cst_1 : f32 to vector<8x128xf32>
    %cst_2 = arith.constant 0.000000e+00 : f32
    %10 = vector.broadcast %cst_2 : f32 to vector<8x128xf32>
    %c0 = arith.constant 0 : index
    %c0_3 = arith.constant 0 : index
    %11 = vector.load %arg2[%c0, %c0_3] : memref<8x128xf32, #tpu.memory_space<vmem>>, vector<8x128xf32>
    %c0_4 = arith.constant 0 : index
    %c0_5 = arith.constant 0 : index
    %12 = vector.load %arg3[%c0_4, %c0_5] : memref<8x128xf32, #tpu.memory_space<vmem>>, vector<8x128xf32>
    %c0_i32_6 = arith.constant 0 : i32
    %13 = arith.subi %3, %c0_i32_6 : i32
    %14 = vector.broadcast %13 : i32 to vector<8x128xi32>
    %15 = arith.cmpi slt, %7, %14 : vector<8x128xi32>
    %cst_7 = arith.constant 0.000000e+00 : f32
    %16 = vector.broadcast %cst_7 : f32 to vector<8x128xf32>
    %17 = arith.cmpf ogt, %11, %16 : vector<8x128xf32>
    %18 = arith.andi %17, %15 : vector<8x128xi1>
    %cst_8 = arith.constant 0.000000e+00 : f32
    %19 = vector.broadcast %cst_8 : f32 to vector<8x128xf32>
    %20 = arith.select %15, %12, %19 : vector<8x128xi1>, vector<8x128xf32>
    %cst_9 = arith.constant 0.000000e+00 : f32
    %21 = vector.broadcast %cst_9 : f32 to vector<8x128xf32>
    %22 = arith.select %18, %20, %21 : vector<8x128xi1>, vector<8x128xf32>
    %23 = vector.shape_cast %22 : vector<8x128xf32> to vector<1x8x128xf32>
    %cst_10 = arith.constant dense<0.000000e+00> : vector<8x128xf32>
    %24 = vector.multi_reduction <add>, %23, %cst_10 [0] : vector<1x8x128xf32> to vector<8x128xf32>
    %25 = arith.addf %8, %24 : vector<8x128xf32>
    %26 = arith.extui %18 : vector<8x128xi1> to vector<8x128xi32>
    %27 = arith.sitofp %26 : vector<8x128xi32> to vector<8x128xf32>
    %28 = vector.shape_cast %27 : vector<8x128xf32> to vector<1x8x128xf32>
    %cst_11 = arith.constant dense<0.000000e+00> : vector<8x128xf32>
    %29 = vector.multi_reduction <add>, %28, %cst_11 [0] : vector<1x8x128xf32> to vector<8x128xf32>
    %30 = arith.addf %9, %29 : vector<8x128xf32>
    %31 = vector.shape_cast %20 : vector<8x128xf32> to vector<1x8x128xf32>
    %cst_12 = arith.constant dense<0.000000e+00> : vector<8x128xf32>
    %32 = vector.multi_reduction <add>, %31, %cst_12 [0] : vector<1x8x128xf32> to vector<8x128xf32>
    %33 = arith.addf %10, %32 : vector<8x128xf32>
    %c0_13 = arith.constant 0 : index
    %c0_14 = arith.constant 0 : index
    %34 = vector.load %arg4[%c0_13, %c0_14] : memref<24x128xf32, #tpu.memory_space<vmem>>, vector<8x128xf32>
    %35 = arith.addf %34, %25 : vector<8x128xf32>
    %c0_15 = arith.constant 0 : index
    %c0_16 = arith.constant 0 : index
    %36 = vector.load %arg4[%c0_15, %c0_16] : memref<24x128xf32, #tpu.memory_space<vmem>>, vector<8x128xf32>
    tpu.vector_store %arg4[%c0_15, %c0_16], %35 {strides = array<i32>} : memref<24x128xf32, #tpu.memory_space<vmem>>, vector<8x128xf32>,
    %c8 = arith.constant 8 : index
    %c0_17 = arith.constant 0 : index
    %37 = vector.load %arg4[%c8, %c0_17] : memref<24x128xf32, #tpu.memory_space<vmem>>, vector<8x128xf32>
    %38 = arith.addf %37, %30 : vector<8x128xf32>
    %c8_18 = arith.constant 8 : index
    %c0_19 = arith.constant 0 : index
    %39 = vector.load %arg4[%c8_18, %c0_19] : memref<24x128xf32, #tpu.memory_space<vmem>>, vector<8x128xf32>
    tpu.vector_store %arg4[%c8_18, %c0_19], %38 {strides = array<i32>} : memref<24x128xf32, #tpu.memory_space<vmem>>, vector<8x128xf32>,
    %c16 = arith.constant 16 : index
    %c0_20 = arith.constant 0 : index
    %40 = vector.load %arg4[%c16, %c0_20] : memref<24x128xf32, #tpu.memory_space<vmem>>, vector<8x128xf32>
    %41 = arith.addf %40, %33 : vector<8x128xf32>
    %c16_21 = arith.constant 16 : index
    %c0_22 = arith.constant 0 : index
    %42 = vector.load %arg4[%c16_21, %c0_22] : memref<24x128xf32, #tpu.memory_space<vmem>>, vector<8x128xf32>
    tpu.vector_store %arg4[%c16_21, %c0_22], %41 {strides = array<i32>} : memref<24x128xf32, #tpu.memory_space<vmem>>, vector<8x128xf32>,
    return
  }
  func.func @transform_0(%arg0: i32, %arg1: i32) -> (i32, i32) {
    %c2_i32 = arith.constant 2 : i32
    %0 = arith.muli %arg1, %c2_i32 : i32
    %1 = arith.addi %0, %arg0 : i32
    %c1_i32 = arith.constant 1 : i32
    %2 = arith.minsi %1, %c1_i32 : i32
    %c0_i32 = arith.constant 0 : i32
    %c0_i32_0 = arith.constant 0 : i32
    return %2, %c0_i32 : i32, i32
  }
  func.func @transform_1(%arg0: i32, %arg1: i32) -> (i32, i32) {
    %c2_i32 = arith.constant 2 : i32
    %0 = arith.muli %arg1, %c2_i32 : i32
    %1 = arith.addi %0, %arg0 : i32
    %c1_i32 = arith.constant 1 : i32
    %2 = arith.minsi %1, %c1_i32 : i32
    %c0_i32 = arith.constant 0 : i32
    %c0_i32_0 = arith.constant 0 : i32
    return %2, %c0_i32 : i32, i32
  }
  func.func @transform_2(%arg0: i32, %arg1: i32) -> (i32, i32) {
    %c0_i32 = arith.constant 0 : i32
    %c0_i32_0 = arith.constant 0 : i32
    return %arg0, %c0_i32 : i32, i32
  }
}

</mosaic_0001>

<bundles_post_ra>
// kernel: tpu_custom_call.1
= control target key start
LH: loop header
LB: loop body
LE: loop exit
PB: predicated region body
PF: predicated region fallthrough
CT: control target
= control target key end

     0   :  { %7 = vsyncpa [#allocation3], 0  ;;  %s957_s0 = inlined_call_operand.hbm [shape: f32[16,128], index: 0, kind: input, shape index: {}]   ;;  %s958_s1 = inlined_call_operand.hbm [shape: f32[16,128], index: 1, kind: input, shape index: {}]   ;;  %s959_s2 = inlined_call_operand.hbm [shape: f32[48,128], index: 2, kind: output, shape index: {}]  }
   0x1   :  { %9 = vsyncpa [#allocation3 + $0x1], 0 }
   0x2   :  { %10 = vsyncpa [#allocation6], 0 }
   0x3   :  { %12 = vsyncpa [#allocation6 + $0x1], 0 }
   0x4   :  { %13 = vsyncpa [#allocation4], 0 }
   0x5   :  { %15 = vsyncpa [#allocation4 + $0x1], 0  ;;  %s702_s9 = smov 0   ;;  %s704_s10 = smov 0  }
   0x6   :  { %s706_s11 = smov 0   ;;  %s708_s12 = smov 0  }
   0x7   :  { %s710_s13 = smov 0   ;;  %s712_s14 = smov 0  }
   0x8   :  { %s714_s15 = smov 0   ;;  %s716_s16 = smov 0  }
   0x9   :  { %s718_s17 = smov 0  }
   0xa LB: > { %s397_s18 = sadd.s32 4294967295, %s679_s17   ;;  %s398_s19 = sadd.s32 4294967294, %s679_s17   ;;  %s679_s17 = sphi %s718_s17, %s21_s17   ;;  %s675_s16 = sphi %s716_s16, %s984_s16   ;;  %s671_s15 = sphi %s714_s15, %s983_s15   ;;  %s667_s14 = sphi %s712_s14, %s982_s14   ;;  %s663_s13 = sphi %s710_s13, %s981_s13   ;;  %s659_s12 = sphi %s708_s12, %s980_s12   ;;  %s655_s11 = sphi %s706_s11, %s979_s11   ;;  %s651_s10 = sphi %s704_s10, %s978_s10   ;;  %s647_s9 = sphi %s702_s9, %s977_s9  }
   0xb   : > { %s33_s20 = sadd.s32 1, %s675_s16  ;;  %p39_p0 = scmp.lt.s32.totalorder %s675_s16, 1 }
   0xc   : > { %p35_p1 = scmp.ge.s32.totalorder %s33_s20, 2  ;;  %s48_s21 = sadd.s32 1, %s667_s14 }
   0xd   : > { %s751_s22 = scalar_select %p39_p0, %s675_s16, 1 }
   0xe   : > { %s986_s20 = smov (%p35_p1, %s33_s20), 0  ;;  %p55_p2 = scmp.ne.s32.totalorder %s667_s14, %s663_s13 }
   0xf   : > { %p56_p3 = scmp.eq.s32.totalorder %s679_s17, 0  ;;  %p43_p4 = scmp.lt.s32.totalorder %s986_s20, 1 }
  0x10   : > { %p61_p5 = scmp.ne.s32.totalorder %s663_s13, %s659_s12  ;;  %p62_p7 = scmp.eq.s32.totalorder %s397_s18, 0 }
  0x11   : > { %p760_p6 = por %p56_p3, %p55_p2  ;;  %s105_s26 = ssub.s32 %s675_s16, %s986_s20 }
  0x12   : > { %s44_s24 = scalar_select %p43_p4, %s986_s20, 1 }
  0x13   : > { %p765_p8 = por %p62_p7, %p61_p5  ;;  %p106_p9 = scmp.eq.s32.totalorder %s105_s26, 0 }
  0x14   : > { %s45_s27 = ssub.s32 %s751_s22, %s44_s24  ;;  %s108_s28 = sadd.s32 1, %s655_s11 }
  0x15   : > { %s964_s25 = scalar_select %p765_p8, 1, 0 }
  0x16   : > { %p46_p10 = scmp.eq.s32.totalorder %s45_s27, 0  ;;  %p118_p11 = scmp.ne.s32.totalorder %s655_s11, %s651_s10 }
  0x17   : > { %s774_s29 = scalar_select %p106_p9, %s655_s11, %s108_s28  }
  0x18   : > { %s777_s30 = scalar_select %p46_p10, %s667_s14, %s48_s21  }
  0x19   : > { %p119_p12 = scmp.eq.s32.totalorder %s397_s18, 1  ;;  %p124_p13 = scmp.ne.s32.totalorder %s651_s10, %s647_s9 }
  0x1a   : > { %p125_p0 = scmp.eq.s32.totalorder %s398_s19, 1  ;;  %p432_p4 = scmp.lt.s32.totalorder %s679_s17, 2 }
  0x1b   : > { %p783_p1 = por %p119_p12, %p118_p11  ;;  %s794_s5 = sand.u32 1, %s667_s14  }
  0x1c   : > { %p788_p3 = por %p125_p0, %p124_p13  ;;  %s402_s6 = sshll.u32 %s751_s22, 7 }
  0x1d   : > { %s965_s3 = scalar_select %p783_p1, 1, 0 }
  0x1e   : > { %s966_s4 = scalar_select %p788_p3, 1, 0 }
  0x1f   : > { %s960_s7 = sshll.u32 %s794_s5, 3  ;;  %s803_s18 = scalar_lea.hbm %s957_s0, %s402_s6 }
  0x20   : > { %s149_s19 = scalar_lea.vmem [#allocation2], %s960_s7  ;;  %p809_p5 = pnand %p432_p4, %p760_p6 }
  0x21   : > { %s160_s21 = sshll.u32 %s149_s19, 4  ;;  %s146_s26 = scalar_lea.sflag [#allocation3], %s794_s5  ;;  %s813_s21 = int_to_ptr.vmem [resolvable:$true] %s160_s21 }
  0x22   : > { %s509_s27 = scalar_lea.hbm %s803_s18, 128  ;;  %p511_p11 = pneg %p809_p5 }
  0x23   : > { %p510_p10 = scmp.ne.s32.totalorder %s803_s18, %s509_s27  ;;  %s514_s8 = scalar_lea.hbm %s957_s0, 256 }
  0x24   : > { %p515_p6 = scmp.lt.u32.totalorder %s803_s18, %s957_s0  ;;  %p516_p0 = scmp.lt.u32.totalorder %s514_s8, %s509_s27 }
  0x25   : > { %p512_p12 = pnand %p511_p11, %p510_p10  ;;  %p518_p2 = scmp.lt.u32.totalorder %s509_s27, %s803_s18 }
  0x26   : > { %p517_p4 = por %p516_p0, %p515_p6 }
  0x27   : > { %p513_p13 = pneg %p512_p12 }
  0x28   : > { %p519_p7 = por %p518_p2, %p517_p4 }
  0x2a   : > { %p520_p9 = pnand %p519_p7, %p513_p13 }
  0x2c   : > { %523 = shalt.err (!%p520_p9)
}
  0x2d   : > { %s524_s7 = scalar_lea.vmem %s813_s21, 128  ;;  %s681_s23 = smov [#allocation2]  }
  0x2e   : > { %p525_p10 = scmp.ne.s32.totalorder %s813_s21, %s524_s7  ;;  %s529_s28 = sshll.u32 %s681_s23, 4  ;;  %s530_s28 = int_to_ptr.vmem [resolvable:$false] %s529_s28 }
  0x2f   : > { %s531_s12 = scalar_lea.vmem %s530_s28, 256  ;;  %p532_p1 = scmp.lt.s32.totalorder %s813_s21, %s530_s28 }
  0x30   : > { %p527_p12 = pnand %p525_p10, %p511_p11  ;;  %p533_p6 = scmp.lt.s32.totalorder %s531_s12, %s524_s7 }
  0x32   : > { %p528_p3 = pneg %p527_p12  ;;  %p534_p0 = por %p533_p6, %p532_p1 }
  0x34   : > { %p535_p2 = pnand %p534_p0, %p528_p3 }
  0x36   : > { %538 = shalt.err (!%p535_p2)
}
  0x37   : > { %424 = dma.hbm_to_vmem [thread:$0]  (!%p809_p5), %s803_s18, 128, %s813_s21, %s146_s26  }
  0x38   : > { %p968_p7 = scmp.lt.s32.totalorder %s679_s17, 3  ;;  %p969_p9 = scmp.ge.s32.totalorder %s679_s17, 1 }
  0x39   : > { %s856_s19 = scalar_lea.hbm %s958_s1, %s402_s6  ;;  %s971_s23 = sshll.u32 %s794_s5, 3 }
  0x3a   : > { %p847_p13 = pnand %p969_p9, %p968_p7  ;;  %s171_s28 = scalar_lea.vmem [#allocation5], %s971_s23 }
  0x3b   : > { %s182_s12 = sshll.u32 %s171_s28, 4  ;;  %s168_s18 = scalar_lea.sflag [#allocation6], %s794_s5  ;;  %s183_s12 = int_to_ptr.vmem [resolvable:$true] %s182_s12 }
  0x3c   : > { %s970_s27 = scalar_select %p847_p13, 1, 0 }
  0x3d   : > { %s539_s21 = scalar_lea.hbm %s856_s19, 128  ;;  %s544_s6 = scalar_lea.hbm %s958_s1, 256 }
  0x3e   : > { %p540_p1 = scmp.ne.s32.totalorder %s856_s19, %s539_s21  ;;  %p545_p10 = scmp.lt.u32.totalorder %s856_s19, %s958_s1 }
  0x3f   : > { %p546_p12 = scmp.lt.u32.totalorder %s544_s6, %s539_s21  ;;  %p548_p0 = scmp.lt.u32.totalorder %s539_s21, %s856_s19 }
  0x40   : > { %p542_p3 = pnand %p540_p1, %p511_p11 }
  0x41   : > { %p547_p6 = por %p546_p12, %p545_p10 }
  0x42   : > { %p543_p4 = pneg %p542_p3 }
  0x43   : > { %p549_p2 = por %p548_p0, %p547_p6 }
  0x45   : > { %p550_p7 = pnand %p549_p2, %p543_p4 }
  0x47   : > { %553 = shalt.err (!%p550_p7)
}
  0x48   : > { %s554_s5 = scalar_lea.vmem %s183_s12, 128  ;;  %s682_s23 = smov [#allocation5]  }
  0x49   : > { %p555_p9 = scmp.ne.s32.totalorder %s183_s12, %s554_s5  ;;  %s559_s28 = sshll.u32 %s682_s23, 4  ;;  %s560_s28 = int_to_ptr.vmem [resolvable:$false] %s559_s28 }
  0x4a   : > { %s561_s22 = scalar_lea.vmem %s560_s28, 256  ;;  %p562_p8 = scmp.lt.s32.totalorder %s183_s12, %s560_s28 }
  0x4b   : > { %p557_p1 = pnand %p555_p9, %p511_p11  ;;  %p563_p13 = scmp.lt.s32.totalorder %s561_s22, %s554_s5 }
  0x4d   : > { %p558_p3 = pneg %p557_p1  ;;  %p564_p10 = por %p563_p13, %p562_p8 }
  0x4f   : > { %p565_p12 = pnand %p564_p10, %p558_p3 }
  0x51   : > { %568 = shalt.err (!%p565_p12)
}
  0x52   : > { %427 = dma.hbm_to_vmem [thread:$0]  (!%p809_p5), %s856_s19, 128, %s183_s12, %s168_s18  }
  0x53   : > { %p972_p4 = scmp.ne.s32.totalorder %s970_s27, 0 }
  0x54   : > { %s193_s21 = sand.u32 (!%p972_p4), 1, %s663_s13   ;;  %p973_p11 = scmp.ne.s32.totalorder (!%p972_p4), %s964_s25, 0 }
  0x55   : > { %191 = sbr.rel (%p972_p4) target bundleno = 123 (0x7b), region = 28  ;;  %s406_s26 = sshll.u32 (!%p972_p4), %s193_s21, 3 }
  0x56   : > { %s194_s6 = scalar_lea.sflag (!%p972_p4), [#allocation3], %s193_s21  ;;  %s197_s7 = scalar_lea.vmem (!%p972_p4), [#allocation2], %s406_s26 }
  0x5c   : > { %634 = dma.done.wait (%p973_p11), %s194_s6, 128  }
  0x5d   : > { %636 = vsyncadd (%p973_p11), %s194_s6, 4294967168  ;;  %s203_s8 = scalar_lea.sflag [#allocation6], %s193_s21  ;;  %s206_s5 = scalar_lea.vmem [#allocation5], %s406_s26 }
  0x5e   : > { %638 = dma.done.wait (%p973_p11), %s203_s8, 128  }
  0x5f   : > { %640 = vsyncadd (%p973_p11), %s203_s8, 4294967168  ;;  %s229_s24 = sand.u32 1, %s651_s10   ;;  %s408_s27 = sshll.u32 %s671_s15, 3  ;;  %v252_v0 = vlaneseq  ;;  %v254_v3 = vld [vmem:[%s197_s7] sm:$0xff]  ;;  %v255_v4 = vld [vmem:[%s206_s5] sm:$0xff]  ;;  %v683_v6 = vmov 0.0  }
  0x60   : > { %s414_s19 = smul.u32 24, %s229_s24  ;;  %s244_s12 = ssub.s32 16, %s408_s27  ;;  %vm258_vm1 = vcmp.gt.f32.partialorder %v254_v3, 0.0 }
  0x61   : > { %v253_v1 = vshrl.u32 %v252_v0, 7  ;;  %v256_v2 = vstv %s244_s12  ;;  %s413_s18 = smul.u32 384, %s671_s15  ;;  %s901_s15 = scalar_lea.sflag [#allocation4], %s229_s24 }
  0x62   : > { %s231_s23 = scalar_lea.vmem [#allocation7], %s414_s19  ;;  %p974_p5 = scmp.ne.s32.totalorder %s965_s3, 0 }
  0x63   : > { %vm257_vm0 = vcmp.lt.s32.totalorder %v253_v1, %v256_v2  ;;  %s293_s25 = sshll.u32 %s231_s23, 4  ;;  %s897_s21 = scalar_lea.hbm %s959_s2, %s413_s18  ;;  %s899_s25 = int_to_ptr.vmem [resolvable:$true] %s293_s25 }
  0x64   : > { %v260_v5 = vsel %vm257_vm0, %v255_v4, 0.0  ;;  %vm259_vm2 = vmand %vm258_vm1, %vm257_vm0  ;;  %s569_s26 = scalar_lea.vmem %s899_s25, 384  ;;  %s684_s6 = smov [#allocation7]  }
  0x65   : > { %v409_v7 = vsel %vm259_vm2, 1.0, %v683_v6  ;;  %v261_v8 = vsel %vm259_vm2, %v260_v5, 0.0  ;;  %278 = vst [vmem:[%s231_s23 + $0x10] sm:$0xff] %v260_v5  ;;  %p570_p8 = scmp.ne.s32.totalorder %s899_s25, %s569_s26  ;;  %s573_s7 = sshll.u32 %s684_s6, 4  ;;  %s574_s7 = int_to_ptr.vmem [resolvable:$false] %s573_s7 }
  0x66   : > { %272 = vst [vmem:[%s231_s23] sm:$0xff] %v261_v8  ;;  %275 = vst [vmem:[%s231_s23 + $0x8] sm:$0xff] %v409_v7  ;;  %s575_s8 = scalar_lea.vmem %s574_s7, 768  ;;  %p576_p0 = scmp.lt.s32.totalorder %s899_s25, %s574_s7 }
  0x67   : > { %p571_p13 = pnand %p570_p8, %p974_p5  ;;  %p577_p2 = scmp.lt.s32.totalorder %s575_s8, %s569_s26 }
  0x69   : > { %p572_p6 = pneg %p571_p13  ;;  %p578_p7 = por %p577_p2, %p576_p0 }
  0x6b   : > { %p579_p9 = pnand %p578_p7, %p572_p6 }
  0x6d   : > { %582 = shalt.err (!%p579_p9)
}
  0x6e   : > { %s583_s5 = scalar_lea.hbm %s897_s21, 384  ;;  %s587_s19 = scalar_lea.hbm %s959_s2, 768 }
  0x6f   : > { %p584_p1 = scmp.ne.s32.totalorder %s897_s21, %s583_s5  ;;  %p588_p12 = scmp.lt.u32.totalorder %s897_s21, %s959_s2 }
  0x70   : > { %p589_p4 = scmp.lt.u32.totalorder %s587_s19, %s583_s5  ;;  %p591_p8 = scmp.lt.u32.totalorder %s583_s5, %s897_s21 }
  0x71   : > { %p585_p3 = pnand %p584_p1, %p974_p5 }
  0x72   : > { %p590_p11 = por %p589_p4, %p588_p12 }
  0x73   : > { %p586_p10 = pneg %p585_p3 }
  0x74   : > { %p592_p13 = por %p591_p8, %p590_p11 }
  0x76   : > { %p593_p6 = pnand %p592_p13, %p586_p10 }
  0x78   : > { %596 = shalt.err (!%p593_p6)
}
  0x79   : > { %s685_s23 = smov 128   ;;  %s686_s28 = smov 8  }
  0x7a   : > { %419 = dma.vmem_to_hbm [thread:$0]  (%p974_p5), %s899_s25, 384, %s897_s21, %s901_s15, %s685_s23, %s685_s23, %s686_s28  }
  0x7b PF: > { %s308_s22 = sand.u32 1, %s647_s9   ;;  %p975_p0 = scmp.ne.s32.totalorder %s966_s4, 0 }
  0x7c   : > { %p976_p2 = scmp.ge.s32.totalorder %s679_s17, 2  ;;  %s309_s26 = scalar_lea.sflag [#allocation4], %s308_s22 }
  0x7e   : > { %p429_p7 = pnand %p976_p2, %p975_p0 }
  0x80   : > { %642 = dma.done.wait (!%p429_p7), %s309_s26, 384  }
  0x81   : > { %644 = vsyncadd (!%p429_p7), %s309_s26, 4294966912  ;;  %s21_s17 = sadd.s32 1, %s679_s17   ;;  %s977_s9 = smov %s651_s10 }
  0x82   : > { %p18_p9 = scmp.ge.s32.totalorder %s21_s17, 4   ;;  %s978_s10 = smov %s655_s11 }
  0x83   : > { %s979_s11 = smov %s774_s29  ;;  %s980_s12 = smov %s663_s13 }
  0x84   : > { %s981_s13 = smov %s667_s14  ;;  %s982_s14 = smov %s777_s30 }
  0x85   : > { %s983_s15 = smov %s675_s16  ;;  %s984_s16 = smov %s986_s20 }
  0x86   :  { %20 = sbr.rel (!%p18_p9) target bundleno = 10 (0xa), region = 90 }
  0x8d   :  { %314 = vsyncpa [#allocation3], 1 }
  0x8e   :  { %316 = vsyncpa [#allocation3 + $0x1], 1 }
  0x8f   :  { %317 = vsyncpa [#allocation6], 1 }
  0x90   :  { %319 = vsyncpa [#allocation6 + $0x1], 1 }
  0x91   :  { %320 = vsyncpa [#allocation4], 1 }
  0x92   :  { %322 = vsyncpa [#allocation4 + $0x1], 1 }

</bundles_post_ra>
